<compile_context>
chip_gen: v7x
topology: tpu7x:2x2x1
jax: 0.10.0
libtpu: 0.0.40
codegen_flags: <defaults>
</compile_context>

<pallas_src>
import functools

import jax
import jax.numpy as jnp
from jax.experimental import pallas as pl


# ----------------------------- shared in-kernel helpers -----------------------------

def _ln(x, g, b, eps=1e-5):
    """LayerNorm over the last axis; g/b are (1, D) and broadcast."""
    mu = jnp.mean(x, axis=-1, keepdims=True)
    var = jnp.mean((x - mu) ** 2, axis=-1, keepdims=True)
    return (x - mu) * jax.lax.rsqrt(var + eps) * g + b


# ----------------------------- Pallas kernels -----------------------------

def _pool_kernel(x_ref, m_ref, o_ref):
    # Fused Upsample(x7, nearest) + AvgPool2d(k): one matmul against the
    # precomputed separable area-pooling matrix kron(A_h, A_w)^T.
    o_ref[...] = jnp.dot(x_ref[...], m_ref[...], preferred_element_type=jnp.float32)


def _embed_kernel(p_ref, w_ref, cls_ref, pos_ref, g_ref, b_ref, o_ref, *, nb, g2):
    # patch-embed matmul + class token + positional embedding + ln_pre, fused.
    w = w_ref[...]                                    # (3*p*p, W)  bf16
    pos = pos_ref[...]                                # (T, W)      f32
    g, b = g_ref[...], b_ref[...]                     # (1, W)      f32
    cls_row = cls_ref[...]                            # (1, W)      f32
    tok = jnp.dot(p_ref[...].astype(jnp.bfloat16), w,
                  preferred_element_type=jnp.float32)     # (nb*g2, W)
    for i in range(nb):                               # static, tiny batch
        xi = jnp.concatenate([cls_row, tok[i * g2:(i + 1) * g2]], axis=0) + pos
        o_ref[i] = _ln(xi, g, b)


def _block_kernel(x_ref, ln1g_ref, ln1b_ref, wqkv_ref, bqkv_ref, wo_ref, bo_ref,
                  ln2g_ref, ln2b_ref, wfc_ref, bfc_ref, wpj_ref, bpj_ref,
                  o_ref, *, heads, dh):
    # One fused CLIP residual-attention block.
    ln1g, ln1b = ln1g_ref[...], ln1b_ref[...]
    ln2g, ln2b = ln2g_ref[...], ln2b_ref[...]
    wqkv = wqkv_ref[...]                              # (3, H, W, dh) bf16
    bqkv = bqkv_ref[...]                              # (3, H, 1, dh) f32
    wo = wo_ref[...]                                  # (H, dh, W)    bf16
    bo = bo_ref[...]                                  # (1, W)        f32
    wfc, bfc = wfc_ref[...], bfc_ref[...]             # (W, 4W) bf16 / (1, 4W) f32
    wpj, bpj = wpj_ref[...], bpj_ref[...]             # (4W, W) bf16 / (1, W)  f32
    scale = 1.0 / float(dh) ** 0.5
    nb = x_ref.shape[0]
    for i in range(nb):                               # static, tiny batch loop
        x = x_ref[i]                                  # (T, W) f32
        h = _ln(x, ln1g, ln1b).astype(jnp.bfloat16)
        attn = jnp.broadcast_to(bo, x.shape)          # out-proj bias, fused
        for hd in range(heads):                       # static head loop (weights pre-split)
            q = jnp.dot(h, wqkv[0, hd], preferred_element_type=jnp.float32) + bqkv[0, hd]
            k = jnp.dot(h, wqkv[1, hd], preferred_element_type=jnp.float32) + bqkv[1, hd]
            v = jnp.dot(h, wqkv[2, hd], preferred_element_type=jnp.float32) + bqkv[2, hd]
            s = jax.lax.dot_general(q.astype(jnp.bfloat16), k.astype(jnp.bfloat16),
                                    (((1,), (1,)), ((), ())),
                                    preferred_element_type=jnp.float32) * scale
            s = s - jnp.max(s, axis=-1, keepdims=True)            # softmax in f32
            p = jnp.exp(s)
            p = p * pl.reciprocal(jnp.sum(p, axis=-1, keepdims=True), approx=True)
            o = jnp.dot(p.astype(jnp.bfloat16), v.astype(jnp.bfloat16),
                        preferred_element_type=jnp.float32)        # (T, dh)
            attn = attn + jnp.dot(o.astype(jnp.bfloat16), wo[hd],
                                  preferred_element_type=jnp.float32)  # (T, W)
        x1 = x + attn                                 # fused residual add
        h2 = _ln(x1, ln2g, ln2b).astype(jnp.bfloat16)
        f = jnp.dot(h2, wfc, preferred_element_type=jnp.float32) + bfc
        f = f * jax.nn.sigmoid(1.702 * f)             # QuickGELU
        m = jnp.dot(f.astype(jnp.bfloat16), wpj, preferred_element_type=jnp.float32) + bpj
        o_ref[i] = x1 + m                             # fused residual add


def _head_kernel(h_ref, g_ref, b_ref, proj_ref, o_ref, *, nb):
    # ln_post on the class token + final linear projection, fused.
    g, b = g_ref[...], b_ref[...]
    cls = jnp.concatenate([h_ref[i][0:1, :] for i in range(nb)], axis=0)   # (NB, W)
    y = _ln(cls, g, b)
    o_ref[...] = jnp.dot(y.astype(jnp.bfloat16), proj_ref[...],
                         preferred_element_type=jnp.float32)


def _loss_kernel(f_ref, o_ref, *, b):
    # feature normalization + cosine similarity + (1 - mean).
    f = f_ref[...]                                    # (2B, D) f32
    f1, f2 = f[:b], f[b:]
    a = f1 * jax.lax.rsqrt(jnp.sum(f1 * f1, axis=-1, keepdims=True))
    c = f2 * jax.lax.rsqrt(jnp.sum(f2 * f2, axis=-1, keepdims=True))
    # after normalization ||a|| = ||c|| = 1, so cosine_similarity == dot product
    sim = jnp.sum(a * c, axis=-1, keepdims=True)      # (B, 1)
    o_ref[...] = 1.0 - jnp.sum(sim, axis=0, keepdims=True) / float(b)


# ----------------------------- wrappers / model glue -----------------------------

def _pool_matrix(size, k):
    """A[o, i] = weight of original pixel i in AvgPool window o after x7 nearest upsample."""
    out = (7 * size) // k
    win = (jnp.arange(out)[:, None] * k + jnp.arange(k)[None, :]) // 7     # (out, k)
    a = (win[:, :, None] == jnp.arange(size)[None, None, :]).astype(jnp.float32)
    return a.sum(axis=1) / float(k)                                        # (out, size)


def preprocess(x, kernel_size):
    """Upsample(scale=7, nearest) + AvgPool2d(kernel_size) without materializing
    the 49x upsampled tensor: a single area-pooling matmul on the original pixels."""
    n, c, h, w = x.shape
    a_h = _pool_matrix(h, kernel_size)
    a_w = _pool_matrix(w, kernel_size)
    ho, wo = a_h.shape[0], a_w.shape[0]
    m_t = jnp.kron(a_h, a_w).T                         # (h*w, ho*wo), lane-dense output
    y = pl.pallas_call(
        _pool_kernel,
        out_shape=jax.ShapeDtypeStruct((n * c, ho * wo), jnp.float32),
    )(x.reshape(n * c, h * w), m_t)
    return y.reshape(n, c, ho, wo)


def encode_image(params, x):
    """CLIP-style VisionTransformer.forward on pooled NCHW input (shared weights)."""
    nb, c, ho, wo = x.shape
    patch, width, heads = params["patch"], params["width"], params["heads"]
    gh, gw = ho // patch, wo // patch
    g2 = gh * gw
    t = g2 + 1
    dh = width // heads
    # conv1 (stride=patch, no bias) == patch-unfold (plain-JAX glue) + matmul
    patches = (x.reshape(nb, c, gh, patch, gw, patch)
                .transpose(0, 2, 4, 1, 3, 5)
                .reshape(nb * g2, c * patch * patch))
    h = pl.pallas_call(
        functools.partial(_embed_kernel, nb=nb, g2=g2),
        out_shape=jax.ShapeDtypeStruct((nb, t, width), jnp.float32),
    )(patches, params["conv_w"], params["class_emb"], params["pos_emb"],
      params["ln_pre_g"], params["ln_pre_b"])
    # TODO(synk): for real ViT-B/32 shapes, give each fused block a tiled grid
    # (parallel over batch/M-tiles, arbitrary over K) with per-generation
    # VMEM-sized bf16 tiles so both v7x TensorCores are used.
    for blk in params["blocks"]:
        h = pl.pallas_call(
            functools.partial(_block_kernel, heads=heads, dh=dh),
            out_shape=jax.ShapeDtypeStruct((nb, t, width), jnp.float32),
        )(h, blk["ln1_g"], blk["ln1_b"], blk["w_qkv"], blk["b_qkv"],
          blk["w_out"], blk["b_out"], blk["ln2_g"], blk["ln2_b"],
          blk["w_fc"], blk["b_fc"], blk["w_proj"], blk["b_proj"])
    out_dim = params["proj"].shape[1]
    return pl.pallas_call(
        functools.partial(_head_kernel, nb=nb),
        out_shape=jax.ShapeDtypeStruct((nb, out_dim), jnp.float32),
    )(h, params["ln_post_g"], params["ln_post_b"], params["proj"])


def clip_image_loss(params, image1, image2, stylegan_size):
    k = stylegan_size // 32
    b = image1.shape[0]
    # both images use the same frozen CLIP weights: encode them in one stacked pass
    x = preprocess(jnp.concatenate([image1, image2], axis=0), k)
    f = encode_image(params, x)                        # (2B, out_dim)
    out = pl.pallas_call(
        functools.partial(_loss_kernel, b=b),
        out_shape=jax.ShapeDtypeStruct((1, 1), jnp.float32),
    )(f)
    return out[0, 0]


def init_params(key, *, width=32, heads=4, layers=2, patch=7, grid=2,
                out_dim=16, in_ch=3):
    # TODO(synk): real ViT-B/32 pretrained weights cannot be loaded; use
    # deterministic synthetic init with the same parameter structure.
    ks = jax.random.split(key, 8 + layers)

    def nrm(k, shape, scale=0.02):
        return scale * jax.random.normal(k, shape, jnp.float32)

    dh = width // heads
    t = grid * grid + 1
    params = dict(
        width=width, heads=heads, patch=patch, grid=grid,
        conv_w=nrm(ks[0], (in_ch * patch * patch, width)).astype(jnp.bfloat16),
        class_emb=nrm(ks[1], (1, width)),
        pos_emb=nrm(ks[2], (t, width)),
        ln_pre_g=1.0 + nrm(ks[3], (1, width)), ln_pre_b=nrm(ks[4], (1, width)),
        ln_post_g=1.0 + nrm(ks[5], (1, width)), ln_post_b=nrm(ks[6], (1, width)),
        proj=nrm(ks[7], (width, out_dim)).astype(jnp.bfloat16),
        blocks=[],
    )
    for i in range(layers):
        bk = jax.random.split(ks[8 + i], 12)
        # QKV / out-proj weights stored pre-split per head (kernel-friendly layout)
        w_qkv = (nrm(bk[2], (width, 3 * width))
                 .reshape(width, 3, heads, dh).transpose(1, 2, 0, 3))     # (3, H, W, dh)
        b_qkv = nrm(bk[3], (3 * width,)).reshape(3, heads, 1, dh)
        w_out = nrm(bk[4], (width, width)).reshape(heads, dh, width)      # (H, dh, W)
        params["blocks"].append(dict(
            ln1_g=1.0 + nrm(bk[0], (1, width)), ln1_b=nrm(bk[1], (1, width)),
            w_qkv=w_qkv.astype(jnp.bfloat16), b_qkv=b_qkv,
            w_out=w_out.astype(jnp.bfloat16), b_out=nrm(bk[5], (1, width)),
            ln2_g=1.0 + nrm(bk[6], (1, width)), ln2_b=nrm(bk[7], (1, width)),
            w_fc=nrm(bk[8], (width, 4 * width)).astype(jnp.bfloat16),
            b_fc=nrm(bk[9], (1, 4 * width)),
            w_proj=nrm(bk[10], (4 * width, width)).astype(jnp.bfloat16),
            b_proj=nrm(bk[11], (1, width)),
        ))
    return params


if __name__ == "__main__":
    key = jax.random.PRNGKey(0)
    kp, k1, k2 = jax.random.split(key, 3)

    # Small synthetic config: 8x8 RGB inputs, stylegan_size=128 -> AvgPool k=4,
    # preprocessed "CLIP" resolution = 14x14, patch=7 -> 2x2 patches + cls token.
    B, C, S = 2, 3, 8
    stylegan_size = 128

    params = init_params(kp, width=32, heads=4, layers=2, patch=7, grid=2, out_dim=16)
    image1 = jax.random.normal(k1, (B, C, S, S), jnp.float32)
    image2 = jax.random.normal(k2, (B, C, S, S), jnp.float32)

    loss = clip_image_loss(params, image1, image2, stylegan_size)
    loss = jax.block_until_ready(loss)
    assert loss.shape == () and jnp.isfinite(loss)
    print("KERNEL_OK")
</pallas_src>

<mosaic_0001>
module attributes {stable_mosaic.version = 11 : i64} {
  func.func @_pool_kernel(%arg0: memref<12x64xf32, #tpu.memory_space<vmem>>, %arg1: memref<64x196xf32, #tpu.memory_space<vmem>>, %arg2: memref<12x196xf32, #tpu.memory_space<vmem>>) attributes {dimension_semantics = [], scalar_prefetch = 0 : i64, scratch_operands = 0 : i64, tpu.core_type = #tpu.core_type<tc>} {
    %c0 = arith.constant 0 : index
    %c0_0 = arith.constant 0 : index
    %0 = vector.load %arg0[%c0, %c0_0] : memref<12x64xf32, #tpu.memory_space<vmem>>, vector<12x64xf32>
    %c0_1 = arith.constant 0 : index
    %c0_2 = arith.constant 0 : index
    %1 = vector.load %arg1[%c0_1, %c0_2] : memref<64x196xf32, #tpu.memory_space<vmem>>, vector<64x196xf32>
    %cst = arith.constant dense<0.000000e+00> : vector<12x196xf32>
    %2 = tpu.matmul %0, %1, %cst {dimension_numbers = #tpu.dot_dimension_numbers<[1], [0], [0], [1], [0, 0, 1, 1], [], []>} : vector<12x64xf32>, vector<64x196xf32>, vector<12x196xf32> -> vector<12x196xf32>
    %c0_3 = arith.constant 0 : index
    %c0_4 = arith.constant 0 : index
    %3 = vector.load %arg2[%c0_3, %c0_4] : memref<12x196xf32, #tpu.memory_space<vmem>>, vector<12x196xf32>
    tpu.vector_store %arg2[%c0_3, %c0_4], %2 {strides = array<i32>} : memref<12x196xf32, #tpu.memory_space<vmem>>, vector<12x196xf32>,
    return
  }
}

</mosaic_0001>

<bundles_post_ra>
// kernel: tpu_custom_call.1
= control target key start
LH: loop header
LB: loop body
LE: loop exit
PB: predicated region body
PF: predicated region fallthrough
CT: control target
= control target key end

     0   :  { %7 = vsyncpa [#allocation3], 0  ;;  %s337_s0 = inlined_call_operand.hbm [shape: f32[12,64], index: 0, kind: input, shape index: {}]   ;;  %s338_s1 = inlined_call_operand.hbm [shape: f32[64,196], index: 1, kind: input, shape index: {}]   ;;  %s339_s2 = inlined_call_operand.hbm [shape: f32[12,196], index: 2, kind: output, shape index: {}]  }
   0x1   :  { %8 = vsyncpa [#allocation6], 0 }
   0x2   :  { %9 = vsyncpa [#allocation4], 0  ;;  %s272_s9 = smov [#allocation2]   ;;  %s200_s13 = scalar_lea.hbm %s337_s0, 256 }
   0x3   :  { %s15_s10 = sshll.u32 %s272_s9, 4  ;;  %p201_p0 = scmp.ne.s32.totalorder %s337_s0, %s200_s13  ;;  %s16_s10 = int_to_ptr.vmem [resolvable:$true] %s15_s10 }
   0x4   :  { %p204_p1 = scmp.lt.u32.totalorder %s200_s13, %s337_s0 }
   0x6   :  { %p206_p2 = pnand %p204_p1, %p201_p0 }
   0x8   :  { %209 = shalt.err (!%p206_p2)
}
   0x9   :  { %s210_s18 = scalar_lea.vmem %s16_s10, 256  ;;  %p215_p4 = scmp.lt.s32.totalorder %s16_s10, %s16_s10 }
   0xa   :  { %p211_p3 = scmp.ne.s32.totalorder %s16_s10, %s210_s18  ;;  %p216_p5 = scmp.lt.s32.totalorder %s210_s18, %s210_s18 }
   0xc   :  { %p217_p6 = por %p216_p5, %p215_p4 }
   0xe   :  { %p218_p7 = pnand %p217_p6, %p211_p3 }
  0x10   :  { %221 = shalt.err (!%p218_p7)
}
  0x11   :  { %s273_s19 = smov 128   ;;  %s274_s20 = smov 8  }
  0x12   :  { %21 = dma.hbm_to_vmem [thread:$0]  %s337_s0, 256, %s16_s10, [#allocation3], %s273_s19, %s273_s19, %s274_s20  }
  0x13   :  { %s275_s23 = smov [#allocation5]   ;;  %s222_s27 = scalar_lea.hbm %s338_s1, 2048 }
  0x14   :  { %s27_s24 = sshll.u32 %s275_s23, 4  ;;  %p223_p8 = scmp.ne.s32.totalorder %s338_s1, %s222_s27  ;;  %s28_s24 = int_to_ptr.vmem [resolvable:$true] %s27_s24 }
  0x15   :  { %p226_p9 = scmp.lt.u32.totalorder %s222_s27, %s338_s1 }
  0x17   :  { %p228_p10 = pnand %p226_p9, %p223_p8 }
  0x19   :  { %231 = shalt.err (!%p228_p10)
}
  0x1a   :  { %s232_s4 = scalar_lea.vmem %s28_s24, 2048  ;;  %p237_p12 = scmp.lt.s32.totalorder %s28_s24, %s28_s24 }
  0x1b   :  { %p233_p11 = scmp.ne.s32.totalorder %s28_s24, %s232_s4  ;;  %p238_p13 = scmp.lt.s32.totalorder %s232_s4, %s232_s4 }
  0x1d   :  { %p239_p0 = por %p238_p13, %p237_p12 }
  0x1f   :  { %p240_p1 = pnand %p239_p0, %p233_p11 }
  0x21   :  { %243 = shalt.err (!%p240_p1)
}
  0x22   :  { %s276_s0 = smov 256   ;;  %s277_s5 = smov 16  }
  0x23   :  { %33 = dma.hbm_to_vmem [thread:$0]  %s338_s1, 2048, %s28_s24, [#allocation6], %s276_s0, %s276_s0, %s277_s5  }
  0x24   :  { %266 = dma.done.wait [#allocation3], 256  }
  0x25   :  { %267 = vsyncadd [#allocation3], 4294967040 }
  0x26   :  { %268 = dma.done.wait [#allocation6], 2048  }
  0x27   :  { %269 = vsyncadd [#allocation6], 4294965248  ;;  %v278_v0 = vmov 0.0   ;;  %v43_v1 = vld [vmem:[#allocation5 + $0x8] sm:$0xff]  ;;  %v45_v2 = vld [vmem:[#allocation5 + $0x18] sm:$0xff]  ;;  %vm58_vm0 = vcmask 523264  }
  0x28   :  { %129 = vmatprep.mubr.f32.mxu0 %v278_v0  ;;  %135 = vmatprep.mubr.f32.mxu1 %v278_v0  ;;  %v42_v3 = vld [vmem:[#allocation5] sm:$0xff]  ;;  %v168_v4 = vpack.c.bf16 %v45_v2, %v43_v1  ;;  %v44_v5 = vld [vmem:[#allocation5 + $0x10] sm:$0xff]  ;;  %v47_v6 = vld [vmem:[#allocation5 + $0x28] sm:$0xff]  ;;  %s279_s1 = smov [#allocation7]   ;;  %vm143_vm1 = vcmask 556032   ;;  %vm146_vm2 = vcmask 551936  }
  0x29   :  { %v49_v7 = vld [vmem:[#allocation5 + $0x38] sm:$0xff]  ;;  %v170_v8 = vpack.c.bf16 %v44_v5, %v42_v3  ;;  %v46_v10 = vld [vmem:[#allocation5 + $0x20] sm:$0xff]  ;;  %v48_v11 = vld [vmem:[#allocation5 + $0x30] sm:$0xff]  ;;  %s153_s8 = sshll.u32 %s279_s1, 4  ;;  %s154_s8 = int_to_ptr.vmem [resolvable:$true] %s153_s8 }
  0x2a   :  { %v172_v9 = vpack.c.bf16 %v49_v7, %v47_v6  ;;  %v51_v12 = vld [vmem:[#allocation5 + $0x48] sm:$0xff]  ;;  %169 = vmatprep.subr.bf16.mxu0 %v168_v4  ;;  %184 = vmatprep.subr.bf16.mxu1 %v168_v4  ;;  %v53_v13 = vld [vmem:[#allocation5 + $0x58] sm:$0xff]  ;;  %v174_v14 = vpack.c.bf16 %v48_v11, %v46_v10  ;;  %v50_v16 = vld [vmem:[#allocation5 + $0x40] sm:$0xff]  ;;  %s244_s9 = scalar_lea.vmem %s154_s8, 512  ;;  %p249_p3 = scmp.lt.s32.totalorder %s154_s8, %s154_s8 }
  0x2b   :  { %171 = vmatpush1.bf16.msra.mxu0 %v170_v8  ;;  %188 = vmatpush1.bf16.msra.mxu1 %v170_v8  ;;  %v176_v15 = vpack.c.bf16 %v53_v13, %v51_v12  ;;  %v52_v17 = vld [vmem:[#allocation5 + $0x50] sm:$0xff]  ;;  %v55_v18 = vld [vmem:[#allocation5 + $0x68] sm:$0xff]  ;;  %v57_v19 = vld [vmem:[#allocation5 + $0x78] sm:$0xff]  ;;  %p245_p2 = scmp.ne.s32.totalorder %s154_s8, %s244_s9  ;;  %p250_p4 = scmp.lt.s32.totalorder %s244_s9, %s244_s9 }
  0x2c   :  { %173 = vmatprep.subr.bf16.mxu0 %v172_v9  ;;  %185 = vmatprep.subr.bf16.mxu1 %v172_v9  ;;  %v178_v20 = vpack.c.bf16 %v52_v17, %v50_v16  ;;  %v180_v21 = vpack.c.bf16 %v57_v19, %v55_v18  ;;  %v54_v22 = vld [vmem:[#allocation5 + $0x60] sm:$0xff]  ;;  %v56_v23 = vld [vmem:[#allocation5 + $0x70] sm:$0xff]  ;;  %v41_v26 = vld [vmem:[#allocation2 + $0x8] sm:$0xf] }
  0x2d   :  { %v182_v24 = vpack.c.bf16 %v56_v23, %v54_v22  ;;  %v40_v25 = vld [vmem:[#allocation2] sm:$0xff]  ;;  %p251_p5 = por %p250_p4, %p249_p3 }
  0x2f   :  { %175 = vmatpush1.bf16.msra.mxu0 %v174_v14  ;;  %189 = vmatpush1.bf16.msra.mxu1 %v174_v14  ;;  %p252_p6 = pnand %p251_p5, %p245_p2 }
  0x30   :  { %177 = vmatprep.subr.bf16.mxu0 %v176_v15  ;;  %186 = vmatprep.subr.bf16.mxu1 %v176_v15 }
  0x33   :  { %179 = vmatpush1.bf16.msra.mxu0 %v178_v20  ;;  %190 = vmatpush1.bf16.msra.mxu1 %v178_v20 }
  0x34   :  { %181 = vmatprep.subr.bf16.mxu0 %v180_v21  ;;  %187 = vmatprep.subr.bf16.mxu1 %v180_v21 }
  0x37   :  { %183 = vmatpush1.bf16.msra.mxu0 %v182_v24  ;;  %191 = vmatpush1.bf16.msra.mxu1 %v182_v24 }
  0x3a   :  { %166 = vmatmul.mubr.msk.f32.vlgmr.msra.gmra.mrb[0].mxu0 %vm58_vm0, %v40_v25  ;;  %167 = vmatmul.mubr.msk.f32.vlgmr.msra.gmra.mrb[0].mxu1 %vm58_vm0, %v41_v26 }
 0x10d   :  { %v131_v27 = vpop.f32.mrb[0].mxu0  ;;  %v137_v28 = vpop.f32.mrb[0].mxu1 }
 0x10e   :  { %142 = vst [vmem:[#allocation7] sm:$0xff] %v131_v27  ;;  %145 = vst [vmem:[#allocation7 + $0x10] sm:$0xf] %v137_v28  ;;  %v133_v29 = vpop.f32.mrb[1].mxu0  ;;  %v139_v30 = vpop.f32.mrb[1].mxu1 }
 0x10f   :  { %144 = vst.msk [vmem:[#allocation7 + $0x8] sm:$0xff] %vm143_vm1, %v133_v29 }
 0x110   :  { %147 = vst.msk [vmem:[#allocation7 + $0x18] sm:$0xf] %vm146_vm2, %v139_v30 }
 0x111   :  { %255 = shalt.err (!%p252_p6)
}
 0x112   :  { %s256_s12 = scalar_lea.hbm %s339_s2, 512 }
 0x113   :  { %p257_p7 = scmp.ne.s32.totalorder %s339_s2, %s256_s12  ;;  %p260_p8 = scmp.lt.u32.totalorder %s256_s12, %s339_s2 }
 0x115   :  { %p262_p9 = pnand %p260_p8, %p257_p7 }
 0x117   :  { %265 = shalt.err (!%p262_p9)
}
 0x118   :  { %159 = dma.vmem_to_hbm [thread:$0]  %s154_s8, 512, %s339_s2, [#allocation4], %s276_s0, %s276_s0, %s277_s5  }
 0x119   :  { %270 = dma.done.wait [#allocation4], 512  }
 0x11a   :  { %271 = vsyncadd [#allocation4], 4294966784 }
 0x11b   :  { %163 = vsyncpa [#allocation3], 1 }
 0x11c   :  { %164 = vsyncpa [#allocation6], 1 }
 0x11d   :  { %165 = vsyncpa [#allocation4], 1 }

</bundles_post_ra>
